<compile_context>
chip_gen: v6e
topology: v6e:2x2x1
jax: 0.10.0
libtpu: 0.0.40
codegen_flags: <defaults>
</compile_context>

<pallas_src>
import functools

import jax
import jax.numpy as jnp
from jax import lax
from jax.experimental import pallas as pl
from jax.experimental.pallas import tpu as pltpu

SMOOTH = 1e-06


def _dice_loss_kernel(logits_ref, targets_ref, out_ref, *,
                      total_rows, row_tile, blocks_per_core, needs_mask,
                      exp_dtype):
    # logits_ref : (TB, C) storage dtype (bf16/f32), VMEM
    # targets_ref: (1, TB) int32, lane-dense, VMEM
    # out_ref    : (1, 8, 128) f32 partial-sum block, one per core, resident
    #              across the inner (row-block) grid axis.
    i = pl.program_id(1)

    @pl.when(i == 0)
    def _init():
        out_ref[...] = jnp.zeros_like(out_ref)

    x = logits_ref[...].astype(jnp.float32)        # cast in-kernel; HBM stays narrow
    tb, c = x.shape

    # Numerically stable softmax pieces; the full probs tensor is never formed.
    m = jnp.max(x, axis=1, keepdims=True)          # (TB, 1)
    xc = x - m
    if exp_dtype == jnp.bfloat16:
        e = jnp.exp(xc.astype(jnp.bfloat16))       # bf16 EUP (v6e/v7x only)
    else:
        e = jnp.exp(xc)                            # (TB, C), only full-width EUP op
    denom = jnp.sum(e, axis=1, keepdims=True, dtype=jnp.float32)   # (TB, 1)

    # picked[r] = e[r, target[r]] via one-hot compare; targets arrive lane-dense
    # as (1, TB) and are relaid out to (TB, 1) (small XLU move, ~TB elements).
    tgt = jnp.transpose(targets_ref[...])          # (TB, 1) int32
    col_ids = lax.broadcasted_iota(jnp.int32, (tb, c), 1)
    picked = jnp.sum(jnp.where(col_ids == tgt, e, 0.0),
                     axis=1, keepdims=True, dtype=jnp.float32)     # (TB, 1)

    # intersection = probs[r, target[r]]; union = sum(probs)+sum(one_hot) == 2
    # exactly (assumes every target is a valid class id in [0, C)).
    intersection = picked * pl.reciprocal(denom, approx=True)
    dice = intersection * (2.0 / (2.0 + SMOOTH)) + (SMOOTH / (2.0 + SMOOTH))

    if needs_mask:
        # Rows past B (ragged tail) and rows of padded/clamped blocks add 0.
        blk = pl.program_id(0) * blocks_per_core + i
        row_ids = blk * row_tile + lax.broadcasted_iota(jnp.int32, (tb, 1), 0)
        dice = jnp.where(row_ids < total_rows, dice, 0.0)

    out_ref[...] += jnp.sum(dice)


def _vmem_limit_bytes():
    try:
        cap = int(pltpu.get_tpu_info().vmem_capacity_bytes)
    except Exception:
        cap = 64 * 1024 * 1024      # assume the tightest budget (v7x) if query fails
    # ~5/8 of physical: ~80 MiB on 128 MiB parts (v5e/v6e), ~40 MiB on v7x.
    return max(16 * 1024 * 1024, min(96 * 1024 * 1024, (cap * 5) // 8))


def _bf16_eup_ok():
    # bf16 transcendentals only where the EUP supports them (v6e / v7x).
    try:
        kind = jax.devices()[0].device_kind.lower()
    except Exception:
        return False
    return ("v6" in kind) or ("v7" in kind)


def dice_loss(logits: jax.Array, targets: jax.Array, *, row_tile=None) -> jax.Array:
    """logits: (B, C) float (f32/bf16); targets: (B,) int labels in [0, C). Scalar loss."""
    B, C = logits.shape
    targets_2d = targets.astype(jnp.int32).reshape(1, B)   # lane-dense, B*4 HBM bytes

    itemsize = jnp.dtype(logits.dtype).itemsize
    vmem_limit = _vmem_limit_bytes()

    if row_tile is None:
        # Budget ~half the VMEM limit for the working set: two double-buffered
        # logits tiles, ~4 full-width f32/i32 temporaries, and a handful of
        # lane-padded (TB,1) per-row vectors (512 B/row each).
        per_row_bytes = C * (2 * itemsize + 16) + 4096
        rows = max((vmem_limit // 2) // max(per_row_bytes, 1), 1)
        if rows >= B:
            row_tile = B
        else:
            # 128-row granularity keeps the lane-dense targets block legal and
            # covers f32/bf16/int8 sublane packing in one constraint.
            row_tile = max((rows // 128) * 128, 128)
            if row_tile >= B:
                row_tile = B
    row_tile = min(row_tile, B)
    if row_tile < B and row_tile % 128 != 0:
        raise ValueError("row_tile must be a multiple of 128 when tiling the batch "
                         "(lane-dense targets block / sublane packing)")

    nb = pl.cdiv(B, row_tile)                 # total row blocks
    num_cores = 2 if nb >= 2 else 1           # v7x megacore split; harmless on 1-TC chips
    blocks_per_core = pl.cdiv(nb, num_cores)
    needs_mask = (num_cores * blocks_per_core * row_tile) != B

    exp_dtype = (jnp.bfloat16
                 if (logits.dtype == jnp.bfloat16 and _bf16_eup_ok())
                 else jnp.float32)

    kernel = functools.partial(
        _dice_loss_kernel, total_rows=B, row_tile=row_tile,
        blocks_per_core=blocks_per_core, needs_mask=needs_mask,
        exp_dtype=exp_dtype)

    def logits_map(c, i):
        return (jnp.minimum(c * blocks_per_core + i, nb - 1), 0)

    def targets_map(c, i):
        return (0, jnp.minimum(c * blocks_per_core + i, nb - 1))

    cost = pl.CostEstimate(
        flops=6 * B * C,
        transcendentals=B * C + B,
        bytes_accessed=B * C * itemsize + B * 4 + num_cores * 8 * 128 * 4,
    )

    out = pl.pallas_call(
        kernel,
        out_shape=jax.ShapeDtypeStruct((num_cores, 8, 128), jnp.float32),
        grid=(num_cores, blocks_per_core),
        in_specs=[
            pl.BlockSpec((row_tile, C), logits_map),
            pl.BlockSpec((1, row_tile), targets_map),
        ],
        out_specs=pl.BlockSpec((1, 8, 128), lambda c, i: (c, 0, 0)),
        compiler_params=pltpu.CompilerParams(
            dimension_semantics=("parallel", "arbitrary"),
            vmem_limit_bytes=vmem_limit,
        ),
        cost_estimate=cost,
    )(logits, targets_2d)

    # Finalize in the wrapper: 1 - (sum of per-core partial dice sums) / B.
    return (1.0 - jnp.sum(out[:, 0, 0]) / B).astype(jnp.float32)


def _dice_loss_ref(logits, targets):
    # Pure-JAX reference mirroring the PyTorch forward.
    probs = jax.nn.softmax(logits.astype(jnp.float32), axis=1)
    one_hot = jax.nn.one_hot(targets, probs.shape[1], dtype=jnp.float32)
    probs_flat = probs.reshape(probs.shape[0], -1)
    targ_flat = one_hot.reshape(one_hot.shape[0], -1)
    intersection = jnp.sum(probs_flat * targ_flat, axis=1)
    union = jnp.sum(probs_flat, axis=1) + jnp.sum(targ_flat, axis=1)
    dice = (2.0 * intersection + SMOOTH) / (union + SMOOTH)
    return 1.0 - jnp.mean(dice)


if __name__ == "__main__":
    key = jax.random.PRNGKey(0)
    k1, k2, k3, k4, k5, k6 = jax.random.split(key, 6)

    # 1) Tiny single-tile f32 path (full-extent blocks, grid (1,1)).
    B, C = 8, 16
    logits = jax.random.normal(k1, (B, C), dtype=jnp.float32)
    targets = jax.random.randint(k2, (B,), 0, C, dtype=jnp.int32)
    loss = jax.block_until_ready(dice_loss(logits, targets))
    ref = jax.block_until_ready(_dice_loss_ref(logits, targets))
    assert jnp.allclose(loss, ref, atol=2e-3, rtol=0), (loss, ref)

    # 2) bf16 storage, ragged batch, 2-way core split (B=200, TB=128, grid (2,1)).
    B2, C2 = 200, 16
    logits2 = jax.random.normal(k3, (B2, C2), dtype=jnp.float32).astype(jnp.bfloat16)
    targets2 = jax.random.randint(k4, (B2,), 0, C2, dtype=jnp.int32)
    loss2 = jax.block_until_ready(dice_loss(logits2, targets2, row_tile=128))
    ref2 = jax.block_until_ready(_dice_loss_ref(logits2, targets2))
    # looser tolerance: bf16 exp may be active on v6e/v7x
    assert jnp.allclose(loss2, ref2, atol=2e-2, rtol=0), (loss2, ref2)

    # 3) f32, odd block count -> one clamped (fully masked) block on the split
    #    plus a ragged tail (B=300, TB=128, grid (2,2)).
    B3, C3 = 300, 32
    logits3 = jax.random.normal(k5, (B3, C3), dtype=jnp.float32)
    targets3 = jax.random.randint(k6, (B3,), 0, C3, dtype=jnp.int32)
    loss3 = jax.block_until_ready(dice_loss(logits3, targets3, row_tile=128))
    ref3 = jax.block_until_ready(_dice_loss_ref(logits3, targets3))
    assert jnp.allclose(loss3, ref3, atol=2e-3, rtol=0), (loss3, ref3)

    print("KERNEL_OK")
</pallas_src>

<mosaic_0001>
module attributes {stable_mosaic.version = 11 : i64} {
  func.func @_dice_loss_kernel(%arg0: i32, %arg1: i32, %arg2: memref<8x16xf32, #tpu.memory_space<vmem>>, %arg3: memref<1x8xi32, #tpu.memory_space<vmem>>, %arg4: memref<1x8x128xf32, #tpu.memory_space<vmem>>) attributes {dimension_semantics = [#tpu.dimension_semantics<parallel>, #tpu.dimension_semantics<arbitrary>], iteration_bounds = array<i64: 1, 1>, scalar_prefetch = 0 : i64, scratch_operands = 0 : i64, tpu.core_type = #tpu.core_type<tc>, window_params = [{transform_indices = @transform_0, window_bounds = array<i64: 8, 16>}, {transform_indices = @transform_1, window_bounds = array<i64: 1, 8>}, {transform_indices = @transform_2, window_bounds = array<i64: 1, 8, 128>}]} {
    %c0_i32 = arith.constant 0 : i32
    %0 = arith.cmpi eq, %arg1, %c0_i32 : i32
    %1 = arith.extui %0 : i1 to i32
    %c0_i32_0 = arith.constant 0 : i32
    %2 = arith.cmpi ne, %1, %c0_i32_0 : i32
    scf.if %2 {
      %cst_16 = arith.constant 0.000000e+00 : f32
      %34 = vector.broadcast %cst_16 : f32 to vector<1x8x128xf32>
      %c0_17 = arith.constant 0 : index
      %c0_18 = arith.constant 0 : index
      %c0_19 = arith.constant 0 : index
      %35 = vector.load %arg4[%c0_17, %c0_18, %c0_19] : memref<1x8x128xf32, #tpu.memory_space<vmem>>, vector<1x8x128xf32>
      tpu.vector_store %arg4[%c0_17, %c0_18, %c0_19], %34 {strides = array<i32>} : memref<1x8x128xf32, #tpu.memory_space<vmem>>, vector<1x8x128xf32>,
    } else {
    }
    %c0 = arith.constant 0 : index
    %c0_1 = arith.constant 0 : index
    %3 = vector.load %arg2[%c0, %c0_1] : memref<8x16xf32, #tpu.memory_space<vmem>>, vector<8x16xf32>
    %cst = arith.constant dense<0xFF800000> : vector<8xf32>
    %4 = vector.multi_reduction <maximumf>, %3, %cst [1] : vector<8x16xf32> to vector<8xf32>
    %5 = vector.shape_cast %4 : vector<8xf32> to vector<8x1xf32>
    %6 = vector.broadcast %5 : vector<8x1xf32> to vector<8x16xf32>
    %7 = arith.subf %3, %6 : vector<8x16xf32>
    %8 = math.exp %7 : vector<8x16xf32>
    %cst_2 = arith.constant dense<0.000000e+00> : vector<8xf32>
    %9 = vector.multi_reduction <add>, %8, %cst_2 [1] : vector<8x16xf32> to vector<8xf32>
    %10 = vector.shape_cast %9 : vector<8xf32> to vector<8x1xf32>
    %c0_3 = arith.constant 0 : index
    %c0_4 = arith.constant 0 : index
    %11 = vector.load %arg3[%c0_3, %c0_4] : memref<1x8xi32, #tpu.memory_space<vmem>>, vector<1x8xi32>
    %12 = tpu.transpose %11, [1, 0] : vector<1x8xi32> -> vector<8x1xi32>
    %13 = tpu.iota {dimensions = array<i32: 1>} : vector<8x16xi32>
    %14 = vector.broadcast %12 : vector<8x1xi32> to vector<8x16xi32>
    %15 = arith.cmpi eq, %13, %14 : vector<8x16xi32>
    %cst_5 = arith.constant 0.000000e+00 : f32
    %16 = vector.broadcast %cst_5 : f32 to vector<8x16xf32>
    %17 = arith.select %15, %8, %16 : vector<8x16xi1>, vector<8x16xf32>
    %cst_6 = arith.constant dense<0.000000e+00> : vector<8xf32>
    %18 = vector.multi_reduction <add>, %17, %cst_6 [1] : vector<8x16xf32> to vector<8xf32>
    %19 = vector.shape_cast %18 : vector<8xf32> to vector<8x1xf32>
    %20 = tpu.reciprocal %10 {approx = true} : vector<8x1xf32> -> vector<8x1xf32>
    %21 = arith.mulf %19, %20 : vector<8x1xf32>
    %cst_7 = arith.constant 0.999999523 : f32
    %22 = vector.broadcast %cst_7 : f32 to vector<8x1xf32>
    %23 = arith.mulf %21, %22 : vector<8x1xf32>
    %cst_8 = arith.constant 4.99999771E-7 : f32
    %24 = vector.broadcast %cst_8 : f32 to vector<8x1xf32>
    %25 = arith.addf %23, %24 : vector<8x1xf32>
    %c0_9 = arith.constant 0 : index
    %c0_10 = arith.constant 0 : index
    %c0_11 = arith.constant 0 : index
    %26 = vector.load %arg4[%c0_9, %c0_10, %c0_11] : memref<1x8x128xf32, #tpu.memory_space<vmem>>, vector<1x8x128xf32>
    %27 = vector.shape_cast %25 : vector<8x1xf32> to vector<1x8x1xf32>
    %cst_12 = arith.constant dense<0.000000e+00> : vector<1xf32>
    %28 = vector.multi_reduction <add>, %27, %cst_12 [1, 2] : vector<1x8x1xf32> to vector<1xf32>
    %29 = vector.shape_cast %28 : vector<1xf32> to vector<1x1x1xf32>
    %30 = vector.extract %29[0, 0, 0] : f32 from vector<1x1x1xf32>
    %31 = vector.broadcast %30 : f32 to vector<1x8x128xf32>
    %32 = arith.addf %26, %31 : vector<1x8x128xf32>
    %c0_13 = arith.constant 0 : index
    %c0_14 = arith.constant 0 : index
    %c0_15 = arith.constant 0 : index
    %33 = vector.load %arg4[%c0_13, %c0_14, %c0_15] : memref<1x8x128xf32, #tpu.memory_space<vmem>>, vector<1x8x128xf32>
    tpu.vector_store %arg4[%c0_13, %c0_14, %c0_15], %32 {strides = array<i32>} : memref<1x8x128xf32, #tpu.memory_space<vmem>>, vector<1x8x128xf32>,
    return
  }
  func.func @transform_0(%arg0: i32, %arg1: i32) -> (i32, i32) {
    %c1_i32 = arith.constant 1 : i32
    %0 = arith.muli %arg0, %c1_i32 : i32
    %1 = arith.addi %0, %arg1 : i32
    %c0_i32 = arith.constant 0 : i32
    %2 = arith.minsi %1, %c0_i32 : i32
    %c0_i32_0 = arith.constant 0 : i32
    %c0_i32_1 = arith.constant 0 : i32
    return %2, %c0_i32_0 : i32, i32
  }
  func.func @transform_1(%arg0: i32, %arg1: i32) -> (i32, i32) {
    %c1_i32 = arith.constant 1 : i32
    %0 = arith.muli %arg0, %c1_i32 : i32
    %1 = arith.addi %0, %arg1 : i32
    %c0_i32 = arith.constant 0 : i32
    %2 = arith.minsi %1, %c0_i32 : i32
    %c0_i32_0 = arith.constant 0 : i32
    %c0_i32_1 = arith.constant 0 : i32
    return %c0_i32_0, %2 : i32, i32
  }
  func.func @transform_2(%arg0: i32, %arg1: i32) -> (i32, i32, i32) {
    %c0_i32 = arith.constant 0 : i32
    %c0_i32_0 = arith.constant 0 : i32
    %c0_i32_1 = arith.constant 0 : i32
    return %arg0, %c0_i32, %c0_i32_0 : i32, i32, i32
  }
}

</mosaic_0001>

<bundles_post_ra>
// kernel: tpu_custom_call.1
= control target key start
LH: loop header
LB: loop body
LE: loop exit
PB: predicated region body
PF: predicated region fallthrough
CT: control target
= control target key end

     0   :  { %7 = vsyncpa [#allocation3], 0  ;;  %s240_s0 = inlined_call_operand.hbm [shape: f32[8,16], index: 0, kind: input, shape index: {}]   ;;  %s241_s1 = inlined_call_operand.vmem [shape: s32[1,8], index: 1, kind: input, shape index: {}]   ;;  %s242_s2 = inlined_call_operand.hbm [shape: f32[1,8,128], index: 2, kind: output, shape index: {}]  }
   0x1   :  { %8 = vsyncpa [#allocation4], 0  ;;  %s210_s9 = smov [#allocation2]  }
   0x2   :  { %s20_s10 = sshll.u32 %s210_s9, 4  ;;  %s21_s10 = int_to_ptr.vmem [resolvable:$true] %s20_s10 }
   0x3   :  { %s174_s11 = scalar_lea.vmem %s21_s10, 128  ;;  %p179_p1 = scmp.lt.s32.totalorder %s21_s10, %s21_s10 }
   0x4   :  { %p175_p0 = scmp.ne.s32.totalorder %s21_s10, %s174_s11  ;;  %p180_p2 = scmp.lt.s32.totalorder %s174_s11, %s174_s11 }
   0x6   :  { %p181_p3 = por %p180_p2, %p179_p1 }
   0x8   :  { %p182_p4 = pnand %p181_p3, %p175_p0 }
   0xa   :  { %185 = shalt.err (!%p182_p4)
}
   0xb   :  { %23 = dma.hbm_to_vmem [thread:$0]  %s240_s0, 128, %s21_s10, [#allocation3]  }
   0xc   :  { %206 = dma.done.wait [#allocation3], 128  }
   0xd   :  { %207 = vsyncadd [#allocation3], 4294967168  ;;  %vm62_vm0 = vcmask 130048   ;;  %v61_v0 = vld [vmem:[#allocation2] sm:$0xff]  ;;  %v211_v2 = vmov 0   ;;  %v105_v10 = vlaneseq  ;;  %vm120_vm2 = vcmask 7168  }
   0xe   :  { %v63_v1 = vsel %vm62_vm0, %v61_v0, -inf  ;;  %160 = vset.pattern.permute.xlu1 %v211_v2  ;;  %v72_v3 = vld [vmem:[%s241_s1] sm:$0x1]  ;;  %s212_s0 = smov [#allocation5]  }
   0xf   :  { %64 = vmax.xlane.f32.xlu0 %v63_v1  ;;  %v106_v11 = vand.u32 127, %v105_v10  ;;  %s140_s1 = sshll.u32 %s212_s0, 4  ;;  %s141_s1 = int_to_ptr.vmem [resolvable:$true] %s140_s1 }
  0x10   :  { %s186_s17 = scalar_lea.vmem %s141_s1, 128  ;;  %p191_p6 = scmp.lt.s32.totalorder %s141_s1, %s141_s1 }
  0x11   :  { %p187_p5 = scmp.ne.s32.totalorder %s141_s1, %s186_s17  ;;  %p192_p7 = scmp.lt.s32.totalorder %s186_s17, %s186_s17 }
  0x13   :  { %p193_p8 = por %p192_p7, %p191_p6 }
  0x15   :  { %p194_p9 = pnand %p193_p8, %p187_p5 }
  0x3c   :  { %73 = vxpose.xlu0.b32.start.end [1/1] (short) (narrow) %v72_v3, 8 }
  0x65   :  { %161 = vset.pattern.permute.xlu0 %v211_v2 }
  0x98   :  { %v65_v4 = vpop.xlane.xlu0 %64 }
  0x99   :  { %v66_v6 = vsub.f32 %v61_v0, %v65_v4 }
  0x9b   :  { %v67_v7 = vmul.f32 1.442695, %v66_v6 }
  0x9d   :  { %162 = vpow2.f32 %v67_v7 }
  0xaa   :  { %v163_v8 = vpop.eup %162 }
  0xab   :  { %v69_v9 = vsel %vm62_vm0, %v163_v8, 0.0 }
  0xb8   :  { %v89_v5 = vpop.trf.xlu0 }
  0xb9   :  { %108 = vperm.xlu1 %160, %v89_v5  }
  0xdd   :  { %70 = vadd.xlane.f32.xlu1 %v69_v9 }
 0x134   :  { %v109_v12 = vpop.permute.xlu1 %108 }
 0x135   :  { %vm110_vm1 = vcmp.eq.s32.totalorder %v106_v11, %v109_v12 }
 0x136   :  { %v111_v13 = vsel %vm110_vm1, %v163_v8, 0.0 }
 0x137   :  { %v112_v14 = vsel %vm62_vm0, %v111_v13, 0.0 }
 0x138   :  { %113 = vadd.xlane.f32.xlu1 %v112_v14 }
 0x166   :  { %v71_v15 = vpop.xlane.xlu1 %70 }
 0x167   :  { %164 = vrcp.f32 %v71_v15 }
 0x174   :  { %v165_v16 = vpop.eup %164 }
 0x1c1   :  { %v114_v17 = vpop.xlane.xlu1 %113 }
 0x1c2   :  { %v116_v18 = vmul.f32 %v165_v16, %v114_v17 }
 0x1c4   :  { %v117_v19 = vmul.f32 0.9999995, %v116_v18 }
 0x1c6   :  { %v118_v20 = vadd.f32 4.9999977e-07, %v117_v19 }
 0x1c8   :  { %v121_v21 = vsel %vm120_vm2, %v118_v20, 0.0 }
 0x1c9   :  { %122 = vadd.xlane.f32.xlu1 %v121_v21 }
 0x252   :  { %v123_v22 = vpop.xlane.xlu1 %122 }
 0x253   :  { %v124_v23 = vrot.slane %v123_v22, 4 }
 0x255   :  { %v125_v24 = vadd.f32 %v124_v23, %v123_v22 }
 0x257   :  { %v126_v25 = vrot.slane %v125_v24, 2 }
 0x259   :  { %v127_v26 = vadd.f32 %v126_v25, %v125_v24 }
 0x25b   :  { %v128_v27 = vrot.slane %v127_v26, 1 }
 0x25d   :  { %v129_v28 = vadd.f32 %v128_v27, %v127_v26 }
 0x25f   :  { %154 = vpush %v129_v28 }
 0x290   :  { %s155_s16 = spop %154 }
 0x291   :  { %v131_v29 = vstv %s155_s16 }
 0x292   :  { %133 = vst [vmem:[#allocation5] sm:$0xff] %v131_v29 }
 0x293   :  { %197 = shalt.err (!%p194_p9)
}
 0x294   :  { %143 = dma.vmem_to_hbm [thread:$0]  %s141_s1, 128, %s242_s2, [#allocation4]  }
 0x295   :  { %208 = dma.done.wait [#allocation4], 128  }
 0x296   :  { %209 = vsyncadd [#allocation4], 4294967168 }
 0x297   :  { %147 = vsyncpa [#allocation3], 1 }
 0x298   :  { %148 = vsyncpa [#allocation4], 1 }

</bundles_post_ra>
